<compile_context>
chip_gen: v7x
topology: tpu7x:2x2x1
jax: 0.10.0
libtpu: 0.0.40
codegen_flags: <defaults>
</compile_context>

<pallas_src>
import jax
import jax.numpy as jnp
from jax import lax
from jax.experimental import pallas as pl
from jax.experimental.pallas import tpu as pltpu

MARGIN = 0.3          # OnlineContrastiveLoss(margin=0.3)
LAMBDA_NOISE = 0.5    # NestedContrastiveWithNoisePenalty(lambda_noise=0.5)


def _round_up(x, m):
    return ((x + m - 1) // m) * m


def _vmem_capacity_bytes():
    try:
        return int(pltpu.get_tpu_info().vmem_capacity_bytes)
    except Exception:
        return 64 << 20  # conservative fallback (v7x per-TensorCore VMEM)


def _cosine_distance_kernel(a_ref, b_ref, dist_ref):
    """Per-row cosine distance for one (TB, D) batch tile -> lane-dense (8, TB) block."""
    a = a_ref[...].astype(jnp.float32)            # native dtype (bf16 ok), upcast in-kernel
    b = b_ref[...].astype(jnp.float32)

    dot = jnp.sum(a * b, axis=-1)                 # (TB,)
    saa = jnp.sum(a * a, axis=-1)
    sbb = jnp.sum(b * b, axis=-1)

    eps2 = jnp.float32(1e-8) * jnp.float32(1e-8)
    # 1/(max(||a||,eps) * max(||b||,eps)) via two EUP rsqrts (no overflow of saa*sbb).
    inv = lax.rsqrt(jnp.maximum(saa, eps2)) * lax.rsqrt(jnp.maximum(sbb, eps2))
    dist = 1.0 - dot * inv                        # (TB,)

    tb = a_ref.shape[0]
    # Lane-dense store (TB multiple of 128 -> unmasked vst). 8 identical sublanes keep the
    # output block (8,128)-tiled; the wrapper keeps sublane 0 only (output bytes are ~1% of
    # the streamed input bytes).
    dist_ref[...] = jnp.broadcast_to(dist, (8, tb))


def _hard_pair_loss_kernel(dist_ref, labels_ref, out_ref):
    """OnlineContrastiveLoss hard-pair selection + loss on lane-dense slabs (one call)."""
    dist = dist_ref[...]                          # (n_tiles, TB) f32
    lab = labels_ref[...]                         # (n_tiles, TB) f32; padded entries = -1
    pos_mask = lab == 1.0
    neg_mask = lab == 0.0

    big = jnp.float32(1e30)
    poss_max = jnp.max(jnp.where(pos_mask, dist, -big))
    negs_min = jnp.min(jnp.where(neg_mask, dist, big))
    n_pos = jnp.sum(pos_mask.astype(jnp.float32))
    n_neg = jnp.sum(neg_mask.astype(jnp.float32))
    poss_mean = jnp.sum(jnp.where(pos_mask, dist, 0.0)) / jnp.maximum(n_pos, 1.0)
    negs_mean = jnp.sum(jnp.where(neg_mask, dist, 0.0)) / jnp.maximum(n_neg, 1.0)

    # negative_pairs = negs[negs < (poss.max() if len(poss) > 1 else negs.mean())]
    neg_thr = jnp.where(n_pos > 1.0, poss_max, negs_mean)
    # positive_pairs = poss[poss > (negs.min() if len(negs) > 1 else poss.mean())]
    pos_thr = jnp.where(n_neg > 1.0, negs_min, poss_mean)

    hard_pos = pos_mask & (dist > pos_thr)
    hard_neg = neg_mask & (dist < neg_thr)

    # positive_loss = positive_pairs.pow(2).sum()
    pos_loss = jnp.sum(jnp.where(hard_pos, dist * dist, 0.0))
    # negative_loss = relu(margin - negative_pairs).pow(2).sum()
    relu_term = jnp.maximum(jnp.float32(MARGIN) - dist, 0.0)
    neg_loss = jnp.sum(jnp.where(hard_neg, relu_term * relu_term, 0.0))

    c_loss = pos_loss + neg_loss
    noise_loss = jnp.float32(0.0)                 # noise penalty is identically zero
    out_ref[0, 0] = c_loss + jnp.float32(LAMBDA_NOISE) * noise_loss
    out_ref[0, 1] = c_loss
    out_ref[0, 2] = noise_loss


def nested_contrastive_with_noise_penalty(emb_a, emb_b, labels, *,
                                          block_rows=None, vmem_budget_bytes=None):
    """Returns (total_loss, c_loss, noise_loss) exactly like the PyTorch forward.

    emb_a, emb_b: (B, D) sentence embeddings (any float dtype, e.g. bf16 — upcast in-kernel).
    labels: (B,) {0, 1}.
    """
    B, D = emb_a.shape
    assert emb_b.shape == (B, D)
    itemsize = jnp.dtype(emb_a.dtype).itemsize

    vmem_capacity = _vmem_capacity_bytes()
    if vmem_budget_bytes is None:
        # 16 MiB streamed working set on 128 MiB-VMEM chips (v5e/v6e), 8 MiB on v7x (64 MiB).
        vmem_budget_bytes = (16 << 20) if vmem_capacity >= (100 << 20) else (8 << 20)

    # Tile rows: multiple of 128 (lane-dense distance rows, aligned sublanes).  The budget
    # counts the double-buffered native-dtype inputs AND ~3x(TB,D) f32 upcast temporaries.
    if block_rows is None:
        bytes_per_row = 2 * 2 * D * itemsize + 3 * D * 4
        block_rows = vmem_budget_bytes // bytes_per_row
    TB = max(128, (int(block_rows) // 128) * 128)
    TB = min(TB, 4096)
    TB = min(TB, _round_up(B, 128))
    n_tiles = int(pl.cdiv(B, TB))
    B_pad = n_tiles * TB

    # Pad batch: zero embeddings, label = -1 so padded rows are neither pos nor neg.
    labels_f = labels.astype(jnp.float32)
    if B_pad != B:
        pad = B_pad - B
        emb_a = jnp.pad(emb_a, ((0, pad), (0, 0)))
        emb_b = jnp.pad(emb_b, ((0, pad), (0, 0)))
        labels_f = jnp.pad(labels_f, (0, pad), constant_values=-1.0)
    labels_lane = labels_f.reshape(n_tiles, TB)        # lane-dense label slab

    # Scoped VMEM: double-buffered inputs + f32 temporaries + output, with headroom;
    # cap is generation-aware (half of physical VMEM, <= 96 MiB).
    in_bytes = 2 * 2 * TB * D * itemsize
    tmp_bytes = 3 * TB * D * 4
    out_bytes = 2 * 8 * TB * 4
    vmem_need = in_bytes + tmp_bytes + out_bytes + (2 << 20)
    scoped_cap = min(max(vmem_capacity // 2, 16 << 20), 96 << 20)
    vmem_limit = int(min(max(vmem_need, 16 << 20), scoped_cap))

    # --- kernel 1: streaming per-row cosine distance (parallel over batch tiles) ---------
    dist8 = pl.pallas_call(
        _cosine_distance_kernel,
        out_shape=jax.ShapeDtypeStruct((n_tiles * 8, TB), jnp.float32),
        grid=(n_tiles,),
        in_specs=[
            pl.BlockSpec((TB, D), lambda i: (i, 0)),   # A tile (streamed, double-buffered)
            pl.BlockSpec((TB, D), lambda i: (i, 0)),   # B tile (streamed, double-buffered)
        ],
        out_specs=pl.BlockSpec((8, TB), lambda i: (i, 0)),
        compiler_params=pltpu.CompilerParams(
            dimension_semantics=("parallel",),          # no carried state -> megacore split
            vmem_limit_bytes=vmem_limit,
        ),
    )(emb_a, emb_b)

    # Keep one of the 8 identical sublane copies per tile -> (n_tiles, TB) lane-dense slab.
    dist_lane = dist8.reshape(n_tiles, 8, TB)[:, 0, :]

    # --- kernel 2: tiny epilogue (hard-pair selection + loss) -----------------------------
    out = pl.pallas_call(
        _hard_pair_loss_kernel,
        out_shape=jax.ShapeDtypeStruct((1, 3), jnp.float32),
        in_specs=[
            pl.BlockSpec(memory_space=pltpu.MemorySpace.VMEM),
            pl.BlockSpec(memory_space=pltpu.MemorySpace.VMEM),
        ],
        out_specs=pl.BlockSpec(memory_space=pltpu.MemorySpace.SMEM),
    )(dist_lane, labels_lane)
    return out[0, 0], out[0, 1], out[0, 2]


def _reference(emb_a, emb_b, labels):
    """Pure-JAX reference of OnlineContrastiveLoss forward for validation."""
    dot = jnp.sum(emb_a * emb_b, axis=-1)
    na = jnp.maximum(jnp.linalg.norm(emb_a, axis=-1), 1e-8)
    nb = jnp.maximum(jnp.linalg.norm(emb_b, axis=-1), 1e-8)
    dist = 1.0 - dot / (na * nb)
    poss = dist[labels == 1]
    negs = dist[labels == 0]
    neg_thr = poss.max() if poss.shape[0] > 1 else negs.mean()
    pos_thr = negs.min() if negs.shape[0] > 1 else poss.mean()
    positive_pairs = poss[poss > pos_thr]
    negative_pairs = negs[negs < neg_thr]
    pos_loss = jnp.sum(positive_pairs ** 2)
    neg_loss = jnp.sum(jnp.maximum(MARGIN - negative_pairs, 0.0) ** 2)
    c_loss = pos_loss + neg_loss
    return c_loss + LAMBDA_NOISE * 0.0, c_loss, 0.0


if __name__ == "__main__":
    key = jax.random.PRNGKey(0)
    k1, k2, k3 = jax.random.split(key, 3)

    # small batch of sentence-embedding pairs (encoder dtype = bf16, like bge-m3)
    B, D = 200, 256
    emb_a = jax.random.normal(k1, (B, D), dtype=jnp.float32).astype(jnp.bfloat16)
    emb_b = jax.random.normal(k2, (B, D), dtype=jnp.float32).astype(jnp.bfloat16)
    labels = jax.random.bernoulli(k3, 0.5, (B,)).astype(jnp.int32)
    labels = labels.at[0].set(1).at[1].set(0)     # guarantee both classes are present

    # multi-tile path (2 x 128-row tiles, padded last tile), bf16 fed straight to the kernel
    total, c_loss, noise_loss = nested_contrastive_with_noise_penalty(
        emb_a, emb_b, labels, block_rows=128)
    jax.block_until_ready((total, c_loss, noise_loss))

    ref_total, ref_c, ref_n = _reference(
        emb_a.astype(jnp.float32), emb_b.astype(jnp.float32), labels)
    assert jnp.allclose(total, ref_total, rtol=1e-4, atol=1e-4), (total, ref_total)
    assert jnp.allclose(c_loss, ref_c, rtol=1e-4, atol=1e-4), (c_loss, ref_c)
    assert float(noise_loss) == 0.0

    # single-tile path (auto tile size), f32 inputs
    t2, c2, n2 = nested_contrastive_with_noise_penalty(
        emb_a.astype(jnp.float32), emb_b.astype(jnp.float32), labels)
    jax.block_until_ready((t2, c2, n2))
    assert jnp.allclose(c2, ref_c, rtol=1e-4, atol=1e-4), (c2, ref_c)
    assert float(n2) == 0.0

    print("KERNEL_OK")
</pallas_src>

<mosaic_0001>
module attributes {stable_mosaic.version = 11 : i64} {
  func.func @_cosine_distance_kernel(%arg0: i32, %arg1: memref<128x256xbf16, #tpu.memory_space<vmem>>, %arg2: memref<128x256xbf16, #tpu.memory_space<vmem>>, %arg3: memref<8x128xf32, #tpu.memory_space<vmem>>) attributes {dimension_semantics = [#tpu.dimension_semantics<parallel>], iteration_bounds = array<i64: 2>, scalar_prefetch = 0 : i64, scratch_operands = 0 : i64, tpu.core_type = #tpu.core_type<tc>, window_params = [{transform_indices = @transform_0, window_bounds = array<i64: 128, 256>}, {transform_indices = @transform_1, window_bounds = array<i64: 128, 256>}, {transform_indices = @transform_2, window_bounds = array<i64: 8, 128>}]} {
    %c0 = arith.constant 0 : index
    %c0_0 = arith.constant 0 : index
    %0 = vector.load %arg1[%c0, %c0_0] : memref<128x256xbf16, #tpu.memory_space<vmem>>, vector<128x256xbf16>
    %1 = arith.extf %0 : vector<128x256xbf16> to vector<128x256xf32>
    %c0_1 = arith.constant 0 : index
    %c0_2 = arith.constant 0 : index
    %2 = vector.load %arg2[%c0_1, %c0_2] : memref<128x256xbf16, #tpu.memory_space<vmem>>, vector<128x256xbf16>
    %3 = arith.extf %2 : vector<128x256xbf16> to vector<128x256xf32>
    %4 = arith.mulf %1, %3 : vector<128x256xf32>
    %cst = arith.constant dense<0.000000e+00> : vector<128xf32>
    %5 = vector.multi_reduction <add>, %4, %cst [1] : vector<128x256xf32> to vector<128xf32>
    %6 = arith.mulf %1, %1 : vector<128x256xf32>
    %cst_3 = arith.constant dense<0.000000e+00> : vector<128xf32>
    %7 = vector.multi_reduction <add>, %6, %cst_3 [1] : vector<128x256xf32> to vector<128xf32>
    %8 = arith.mulf %3, %3 : vector<128x256xf32>
    %cst_4 = arith.constant dense<0.000000e+00> : vector<128xf32>
    %9 = vector.multi_reduction <add>, %8, %cst_4 [1] : vector<128x256xf32> to vector<128xf32>
    %cst_5 = arith.constant 9.99999993E-9 : f32
    %cst_6 = arith.constant 9.99999993E-9 : f32
    %10 = arith.mulf %cst_5, %cst_6 : f32
    %11 = vector.broadcast %10 : f32 to vector<128xf32>
    %12 = arith.maximumf %7, %11 : vector<128xf32>
    %13 = math.rsqrt %12 : vector<128xf32>
    %14 = vector.broadcast %10 : f32 to vector<128xf32>
    %15 = arith.maximumf %9, %14 : vector<128xf32>
    %16 = math.rsqrt %15 : vector<128xf32>
    %17 = arith.mulf %13, %16 : vector<128xf32>
    %18 = arith.mulf %5, %17 : vector<128xf32>
    %cst_7 = arith.constant 1.000000e+00 : f32
    %19 = vector.broadcast %cst_7 : f32 to vector<128xf32>
    %20 = arith.subf %19, %18 : vector<128xf32>
    %21 = vector.shape_cast %20 : vector<128xf32> to vector<1x128xf32>
    %22 = vector.broadcast %21 : vector<1x128xf32> to vector<8x128xf32>
    %c0_8 = arith.constant 0 : index
    %c0_9 = arith.constant 0 : index
    %23 = vector.load %arg3[%c0_8, %c0_9] : memref<8x128xf32, #tpu.memory_space<vmem>>, vector<8x128xf32>
    tpu.vector_store %arg3[%c0_8, %c0_9], %22 {strides = array<i32>} : memref<8x128xf32, #tpu.memory_space<vmem>>, vector<8x128xf32>,
    return
  }
  func.func @transform_0(%arg0: i32) -> (i32, i32) {
    %c0_i32 = arith.constant 0 : i32
    %c0_i32_0 = arith.constant 0 : i32
    return %arg0, %c0_i32 : i32, i32
  }
  func.func @transform_1(%arg0: i32) -> (i32, i32) {
    %c0_i32 = arith.constant 0 : i32
    %c0_i32_0 = arith.constant 0 : i32
    return %arg0, %c0_i32 : i32, i32
  }
  func.func @transform_2(%arg0: i32) -> (i32, i32) {
    %c0_i32 = arith.constant 0 : i32
    %c0_i32_0 = arith.constant 0 : i32
    return %arg0, %c0_i32 : i32, i32
  }
}

</mosaic_0001>

<bundles_post_ra>
// kernel: tpu_custom_call.1
= control target key start
LH: loop header
LB: loop body
LE: loop exit
PB: predicated region body
PF: predicated region fallthrough
CT: control target
= control target key end

     0   :  { %7 = vsyncpa [#allocation3], 0  ;;  %s1905_s0 = inlined_call_operand.hbm [shape: bf16[256,256], index: 0, kind: input, shape index: {}]   ;;  %s1906_s1 = inlined_call_operand.hbm [shape: bf16[256,256], index: 1, kind: input, shape index: {}]   ;;  %s1907_s2 = inlined_call_operand.hbm [shape: f32[16,128], index: 2, kind: output, shape index: {}]  }
   0x1   :  { %9 = vsyncpa [#allocation3 + $0x1], 0 }
   0x2   :  { %10 = vsyncpa [#allocation6], 0 }
   0x3   :  { %12 = vsyncpa [#allocation6 + $0x1], 0 }
   0x4   :  { %13 = vsyncpa [#allocation4], 0 }
   0x5   :  { %15 = vsyncpa [#allocation4 + $0x1], 0  ;;  %s1194_s9 = smov 0   ;;  %s1196_s10 = smov 0  }
   0x6   :  { %s1198_s11 = smov 0   ;;  %s1200_s12 = smov 0  }
   0x7 LB: > { %s1215_s13 = sadd.s32 4294967295, %s1172_s12   ;;  %s902_s14 = sadd.s32 4294967294, %s1172_s12   ;;  %s1172_s12 = sphi %s1200_s12, %s1962_s12   ;;  %s1168_s11 = sphi %s1198_s11, %s1961_s11   ;;  %s1164_s10 = sphi %s1196_s10, %s1960_s10   ;;  %s1160_s9 = sphi %s1194_s9, %s1959_s9  }
   0x8   : > { %s1219_s15 = sadd.s32 1, %s1172_s12   ;;  %s28_s16 = sadd.s32 1, %s1168_s11 }
   0x9   : > { %s25_s17 = ssub.s32 %s1172_s12, %s1219_s15  ;;  %p35_p0 = scmp.ne.s32.totalorder %s1168_s11, %s1164_s10 }
   0xa   : > { %p26_p1 = scmp.eq.s32.totalorder %s25_s17, 0  ;;  %p36_p2 = scmp.eq.s32.totalorder %s1172_s12, 0 }
   0xb   : > { %p41_p3 = scmp.ne.s32.totalorder %s1164_s10, %s1160_s9  ;;  %p42_p4 = scmp.eq.s32.totalorder %s1215_s13, 0 }
   0xc   : > { %s1231_s18 = scalar_select %p26_p1, %s1168_s11, %s28_s16  }
   0xd   : > { %p1233_p5 = por %p36_p2, %p35_p0  ;;  %p1237_p6 = por %p42_p4, %p41_p3 }
   0xe   : > { %p91_p7 = scmp.eq.s32.totalorder %s1215_s13, 1  ;;  %p97_p8 = scmp.eq.s32.totalorder %s902_s14, 1 }
   0xf   : > { %s1924_s20 = scalar_select %p1237_p6, 1, 0 }
  0x10   : > { %p942_p10 = scmp.lt.s32.totalorder %s1172_s12, 2  ;;  %p1244_p11 = por %p91_p7, %p35_p0 }
  0x11   : > { %p1248_p12 = por %p97_p8, %p41_p3  ;;  %s1253_s23 = sand.u32 1, %s1168_s11  }
  0x12   : > { %s1925_s21 = scalar_select %p1244_p11, 1, 0 }
  0x13   : > { %s1926_s22 = scalar_select %p1248_p12, 1, 0 }
  0x14   : > { %s922_s24 = sshll.u32 %s1172_s12, 11  ;;  %s905_s25 = sshll.u32 %s1253_s23, 7 }
  0x15   : > { %s1262_s28 = scalar_lea.hbm %s1905_s0, %s922_s24  ;;  %s121_s29 = scalar_lea.vmem [#allocation2], %s905_s25 }
  0x16   : > { %s129_s30 = sshll.u32 %s121_s29, 4  ;;  %p1268_p13 = pnand %p942_p10, %p1233_p5  ;;  %s1272_s30 = int_to_ptr.vmem [resolvable:$true] %s129_s30 }
  0x17   : > { %s118_s4 = scalar_lea.sflag [#allocation3], %s1253_s23  ;;  %s1042_s5 = scalar_lea.hbm %s1262_s28, 2048 }
  0x18   : > { %p1043_p0 = scmp.ne.s32.totalorder %s1262_s28, %s1042_s5  ;;  %p1044_p1 = pneg %p1268_p13 }
  0x19   : > { %s1047_s8 = scalar_lea.hbm %s1905_s0, 4096  ;;  %p1048_p4 = scmp.lt.u32.totalorder %s1262_s28, %s1905_s0 }
  0x1a   : > { %p1045_p2 = pnand %p1044_p1, %p1043_p0  ;;  %p1049_p5 = scmp.lt.u32.totalorder %s1047_s8, %s1042_s5 }
  0x1b   : > { %p1051_p8 = scmp.lt.u32.totalorder %s1042_s5, %s1262_s28 }
  0x1c   : > { %p1046_p3 = pneg %p1045_p2  ;;  %p1050_p7 = por %p1049_p5, %p1048_p4 }
  0x1e   : > { %p1052_p10 = por %p1051_p8, %p1050_p7 }
  0x20   : > { %p1053_p9 = pnand %p1052_p10, %p1046_p3 }
  0x22   : > { %1056 = shalt.err (!%p1053_p9)
}
  0x23   : > { %s1057_s17 = scalar_lea.vmem %s1272_s30, 2048  ;;  %s1174_s19 = smov [#allocation2]  }
  0x24   : > { %p1058_p0 = scmp.ne.s32.totalorder %s1272_s30, %s1057_s17  ;;  %s1062_s26 = sshll.u32 %s1174_s19, 4  ;;  %s1063_s26 = int_to_ptr.vmem [resolvable:$false] %s1062_s26 }
  0x25   : > { %s1064_s27 = scalar_lea.vmem %s1063_s26, 4096  ;;  %p1065_p11 = scmp.lt.s32.totalorder %s1272_s30, %s1063_s26 }
  0x26   : > { %p1060_p2 = pnand %p1058_p0, %p1044_p1  ;;  %p1066_p4 = scmp.lt.s32.totalorder %s1064_s27, %s1057_s17 }
  0x28   : > { %p1061_p12 = pneg %p1060_p2  ;;  %p1067_p5 = por %p1066_p4, %p1065_p11 }
  0x2a   : > { %p1068_p7 = pnand %p1067_p5, %p1061_p12 }
  0x2c   : > { %1071 = shalt.err (!%p1068_p7)
}
  0x2d   : > { %s1175_s29 = smov 128   ;;  %s1176_s5 = smov 8  }
  0x2e   : > { %934 = dma.hbm_to_vmem [thread:$0]  (!%p1268_p13), %s1262_s28, 2048, %s1272_s30, %s118_s4, %s1175_s29, %s1175_s29, %s1176_s5  }
  0x2f   : > { %p913_p9 = scmp.ge.s32.totalorder %s1172_s12, 1  ;;  %p159_p11 = scmp.lt.s32.totalorder %s1172_s12, 3 }
  0x30   : > { %s1316_s14 = scalar_lea.hbm %s1906_s1, %s922_s24  ;;  %s143_s16 = scalar_lea.vmem [#allocation5], %s905_s25 }
  0x31   : > { %p1307_p12 = pnand %p913_p9, %p159_p11  ;;  %s151_s17 = sshll.u32 %s143_s16, 4  ;;  %s1320_s17 = int_to_ptr.vmem [resolvable:$true] %s151_s17 }
  0x32   : > { %s140_s28 = scalar_lea.sflag [#allocation6], %s1253_s23  ;;  %s1072_s30 = scalar_lea.hbm %s1316_s14, 2048 }
  0x33   : > { %p1073_p3 = scmp.ne.s32.totalorder %s1316_s14, %s1072_s30  ;;  %s1077_s24 = scalar_lea.hbm %s1906_s1, 4096 }
  0x34   : > { %p1078_p0 = scmp.lt.u32.totalorder %s1316_s14, %s1906_s1  ;;  %p1079_p2 = scmp.lt.u32.totalorder %s1077_s24, %s1072_s30 }
  0x35   : > { %p1075_p8 = pnand %p1073_p3, %p1044_p1  ;;  %p1081_p5 = scmp.lt.u32.totalorder %s1072_s30, %s1316_s14 }
  0x36   : > { %p1080_p4 = por %p1079_p2, %p1078_p0 }
  0x37   : > { %p1076_p10 = pneg %p1075_p8 }
  0x38   : > { %p1082_p7 = por %p1081_p5, %p1080_p4 }
  0x3a   : > { %p1083_p9 = pnand %p1082_p7, %p1076_p10 }
  0x3c   : > { %1086 = shalt.err (!%p1083_p9)
}
  0x3d   : > { %s1087_s25 = scalar_lea.vmem %s1320_s17, 2048  ;;  %s1177_s7 = smov [#allocation5]  }
  0x3e   : > { %p1088_p11 = scmp.ne.s32.totalorder %s1320_s17, %s1087_s25  ;;  %s1092_s8 = sshll.u32 %s1177_s7, 4  ;;  %s1093_s8 = int_to_ptr.vmem [resolvable:$false] %s1092_s8 }
  0x3f   : > { %s1094_s16 = scalar_lea.vmem %s1093_s8, 4096  ;;  %p1095_p6 = scmp.lt.s32.totalorder %s1320_s17, %s1093_s8 }
  0x40   : > { %p1090_p3 = pnand %p1088_p11, %p1044_p1  ;;  %p1096_p0 = scmp.lt.s32.totalorder %s1094_s16, %s1087_s25 }
  0x42   : > { %p1091_p8 = pneg %p1090_p3  ;;  %p1097_p2 = por %p1096_p0, %p1095_p6 }
  0x44   : > { %p1098_p4 = pnand %p1097_p2, %p1091_p8 }
  0x46   : > { %1101 = shalt.err (!%p1098_p4)
}
  0x47   : > { %937 = dma.hbm_to_vmem [thread:$0]  (!%p1268_p13), %s1316_s14, 2048, %s1320_s17, %s140_s28, %s1175_s29, %s1175_s29, %s1176_s5  }
  0x48   : > { %163 = sbr.rel (%p1307_p12) target bundleno = 349 (0x15d), region = 28 }
  0x4f   : > { %s1354_s30 = sand.u32 1, %s1164_s10   ;;  %p1929_p6 = scmp.ne.s32.totalorder %s1924_s20, 0 }
  0x50   : > { %s914_s4 = sshll.u32 %s1354_s30, 7  ;;  %s166_s19 = scalar_lea.sflag [#allocation3], %s1354_s30 }
  0x51   : > { %s1358_s3 = scalar_lea.vmem [#allocation2], %s914_s4 }
  0x52   : > { %1147 = dma.done.wait (%p1929_p6), %s166_s19, 2048  }
  0x53   : > { %1149 = vsyncadd (%p1929_p6), %s166_s19, 4294965248  ;;  %s175_s23 = scalar_lea.sflag [#allocation6], %s1354_s30  ;;  %s1365_s29 = scalar_lea.vmem [#allocation5], %s914_s4 }
  0x54   : > { %1151 = dma.done.wait (%p1929_p6), %s175_s23, 2048  }
  0x55   : > { %1153 = vsyncadd (%p1929_p6), %s175_s23, 4294965248  ;;  %v254_v0 = vld [vmem:[%s1365_s29] sm:$0xff]  ;;  %v255_v2 = vld [vmem:[%s1365_s29 + $0x8] sm:$0xff]  ;;  %vm681_vm0 = vcmask 130112   ;;  %vm688_vm1 = vcmask 195712   ;;  %vm695_vm2 = vcmask 261312  }
  0x56   : > { %v206_v1 = vld [vmem:[%s1358_s3] sm:$0xff]  ;;  %v1374_v3 = vunpack.c.l.bf16 %v254_v0  ;;  %v1376_v4 = vunpack.c.h.bf16 %v254_v0  ;;  %v207_v7 = vld [vmem:[%s1358_s3 + $0x8] sm:$0xff]  ;;  %v1383_v8 = vunpack.c.l.bf16 %v255_v2  ;;  %v1385_v9 = vunpack.c.h.bf16 %v255_v2  ;;  %v256_v12 = vld [vmem:[%s1365_s29 + $0x10] sm:$0xff]  ;;  %s916_s20 = sshll.u32 %s1354_s30, 3  ;;  %s918_s5 = sshll.u32 %s1215_s13, 7 }
  0x57   : > { %v1378_v5 = vunpack.c.l.bf16 %v206_v1  ;;  %v1380_v6 = vunpack.c.h.bf16 %v206_v1  ;;  %v1387_v10 = vunpack.c.l.bf16 %v207_v7  ;;  %v1389_v11 = vunpack.c.h.bf16 %v207_v7  ;;  %v208_v17 = vld [vmem:[%s1358_s3 + $0x10] sm:$0xff]  ;;  %v257_v22 = vld [vmem:[%s1365_s29 + $0x18] sm:$0xff]  ;;  %v258_v36 = vld [vmem:[%s1365_s29 + $0x20] sm:$0xff]  ;;  %s203_s6 = scalar_lea.vmem [#allocation7], %s916_s20  ;;  %s1861_s24 = scalar_lea.hbm %s1907_s2, %s918_s5 }
  0x58   : > { %v462_v13 = vmul.f32 %v1374_v3, %v1374_v3  ;;  %v463_v14 = vmul.f32 %v1376_v4, %v1376_v4  ;;  %v464_v18 = vmul.f32 %v1383_v8, %v1383_v8  ;;  %v465_v19 = vmul.f32 %v1385_v9, %v1385_v9  ;;  %v209_v27 = vld [vmem:[%s1358_s3 + $0x18] sm:$0xff]  ;;  %v210_v41 = vld [vmem:[%s1358_s3 + $0x20] sm:$0xff]  ;;  %v259_v44 = vld [vmem:[%s1365_s29 + $0x28] sm:$0xff]  ;;  %s809_s14 = sshll.u32 %s203_s6, 4  ;;  %s796_s13 = scalar_lea.sflag [#allocation4], %s1354_s30  ;;  %s1863_s14 = int_to_ptr.vmem [resolvable:$true] %s809_s14 }
  0x59   : > { %v382_v15 = vmul.f32 %v1378_v5, %v1378_v5  ;;  %v383_v16 = vmul.f32 %v1380_v6, %v1380_v6  ;;  %v384_v20 = vmul.f32 %v1387_v10, %v1387_v10  ;;  %v385_v21 = vmul.f32 %v1389_v11, %v1389_v11  ;;  %v211_v49 = vld [vmem:[%s1358_s3 + $0x28] sm:$0xff]  ;;  %v260_v61 = vld [vmem:[%s1365_s29 + $0x30] sm:$0xff]  ;;  %s1102_s26 = scalar_lea.vmem %s1863_s14, 128  ;;  %p1956_p1 = scmp.ne.s32.totalorder %s1925_s21, 0 }
  0x5a   : > { %v494_v23 = vadd.f32 %v463_v14, %v462_v13  ;;  %v1410_v25 = vunpack.c.l.bf16 %v256_v12  ;;  %v1412_v26 = vunpack.c.h.bf16 %v256_v12  ;;  %v497_v28 = vadd.f32 %v465_v19, %v464_v18  ;;  %v212_v2 = vld [vmem:[%s1358_s3 + $0x30] sm:$0xff]  ;;  %p1103_p13 = scmp.ne.s32.totalorder %s1863_s14, %s1102_s26  ;;  %s1178_s27 = smov [#allocation7]  }
  0x5b   : > { %v414_v24 = vadd.f32 %v383_v16, %v382_v15  ;;  %v417_v29 = vadd.f32 %v385_v21, %v384_v20  ;;  %v1415_v30 = vunpack.c.l.bf16 %v208_v17  ;;  %v1417_v31 = vunpack.c.h.bf16 %v208_v17  ;;  %v261_v20 = vld [vmem:[%s1365_s29 + $0x38] sm:$0xff]  ;;  %s1106_s25 = sshll.u32 %s1178_s27, 4  ;;  %s1107_s25 = int_to_ptr.vmem [resolvable:$false] %s1106_s25 }
  0x5c   : > { %495 = vadd.xlane.f32.xlu1 %v494_v23  ;;  %v466_v32 = vmul.f32 %v1410_v25, %v1410_v25  ;;  %v467_v33 = vmul.f32 %v1412_v26, %v1412_v26  ;;  %v1423_v34 = vunpack.c.l.bf16 %v257_v22  ;;  %v1425_v35 = vunpack.c.h.bf16 %v257_v22  ;;  %v213_v21 = vld [vmem:[%s1358_s3 + $0x38] sm:$0xff]  ;;  %p1104_p12 = pnand %p1103_p13, %p1956_p1  ;;  %s1108_s7 = scalar_lea.vmem %s1107_s25, 256 }
  0x5d   : > { %415 = vadd.xlane.f32.xlu0 %v414_v24  ;;  %v386_v37 = vmul.f32 %v1415_v30, %v1415_v30  ;;  %v387_v38 = vmul.f32 %v1417_v31, %v1417_v31  ;;  %v1432_v39 = vunpack.c.l.bf16 %v209_v27  ;;  %v1434_v40 = vunpack.c.h.bf16 %v209_v27  ;;  %p1109_p5 = scmp.lt.s32.totalorder %s1863_s14, %s1107_s25  ;;  %p1110_p7 = scmp.lt.s32.totalorder %s1108_s7, %s1102_s26 }
  0x5e   : > { %v500_v42 = vadd.f32 %v467_v33, %v466_v32  ;;  %v468_v43 = vmul.f32 %v1423_v34, %v1423_v34  ;;  %v469_v46 = vmul.f32 %v1425_v35, %v1425_v35  ;;  %v1442_v47 = vunpack.c.l.bf16 %v258_v36  ;;  %v262_v33 = vld [vmem:[%s1365_s29 + $0x40] sm:$0xff]  ;;  %p1105_p10 = pneg %p1104_p12 }
  0x5f   : > { %v420_v45 = vadd.f32 %v387_v38, %v386_v37  ;;  %v1444_v48 = vunpack.c.h.bf16 %v258_v36  ;;  %v388_v50 = vmul.f32 %v1432_v39, %v1432_v39  ;;  %v389_v51 = vmul.f32 %v1434_v40, %v1434_v40  ;;  %p1111_p9 = por %p1110_p7, %p1109_p5 }
  0x60   : > { %498 = vadd.xlane.f32.xlu1 %v497_v28  ;;  %v1451_v52 = vunpack.c.l.bf16 %v210_v41  ;;  %v1453_v53 = vunpack.c.h.bf16 %v210_v41  ;;  %v1455_v54 = vunpack.c.l.bf16 %v259_v44  ;;  %v1457_v55 = vunpack.c.h.bf16 %v259_v44  ;;  %v214_v41 = vld [vmem:[%s1358_s3 + $0x40] sm:$0xff] }
  0x61   : > { %418 = vadd.xlane.f32.xlu0 %v417_v29  ;;  %v1459_v56 = vunpack.c.l.bf16 %v211_v49  ;;  %v1461_v57 = vunpack.c.h.bf16 %v211_v49  ;;  %v503_v58 = vadd.f32 %v469_v46, %v468_v43  ;;  %v470_v59 = vmul.f32 %v1442_v47, %v1442_v47  ;;  %p1112_p11 = pnand %p1111_p9, %p1105_p10 }
  0x62   : > { %v471_v60 = vmul.f32 %v1444_v48, %v1444_v48  ;;  %v423_v62 = vadd.f32 %v389_v51, %v388_v50  ;;  %v390_v63 = vmul.f32 %v1451_v52, %v1451_v52  ;;  %v391_v0 = vmul.f32 %v1453_v53, %v1453_v53 }
  0x63   : > { %v472_v1 = vmul.f32 %v1455_v54, %v1455_v54  ;;  %v473_v7 = vmul.f32 %v1457_v55, %v1457_v55  ;;  %v392_v12 = vmul.f32 %v1459_v56, %v1459_v56  ;;  %v393_v13 = vmul.f32 %v1461_v57, %v1461_v57 }
  0x64   : > { %501 = vadd.xlane.f32.xlu1 %v500_v42  ;;  %v1481_v14 = vunpack.c.l.bf16 %v260_v61  ;;  %v506_v15 = vadd.f32 %v471_v60, %v470_v59  ;;  %v426_v16 = vadd.f32 %v391_v0, %v390_v63  ;;  %v1483_v17 = vunpack.c.h.bf16 %v260_v61  ;;  %v263_v60 = vld [vmem:[%s1365_s29 + $0x48] sm:$0xff]  ;;  %v264_v0 = vld [vmem:[%s1365_s29 + $0x50] sm:$0xff] }
  0x65   : > { %421 = vadd.xlane.f32.xlu0 %v420_v45  ;;  %v1485_v18 = vunpack.c.l.bf16 %v212_v2  ;;  %v1487_v19 = vunpack.c.h.bf16 %v212_v2  ;;  %v509_v22 = vadd.f32 %v473_v7, %v472_v1  ;;  %v429_v23 = vadd.f32 %v393_v13, %v392_v12  ;;  %v215_v61 = vld [vmem:[%s1358_s3 + $0x48] sm:$0xff] }
  0x66   : > { %v474_v24 = vmul.f32 %v1481_v14, %v1481_v14  ;;  %v1493_v27 = vunpack.c.l.bf16 %v261_v20  ;;  %v1495_v28 = vunpack.c.h.bf16 %v261_v20  ;;  %v1497_v29 = vunpack.c.l.bf16 %v213_v21 }
  0x67   : > { %v1499_v32 = vunpack.c.h.bf16 %v213_v21  ;;  %v475_v36 = vmul.f32 %v1483_v17, %v1483_v17  ;;  %v394_v37 = vmul.f32 %v1485_v18, %v1485_v18  ;;  %v395_v38 = vmul.f32 %v1487_v19, %v1487_v19  ;;  %v216_v21 = vld [vmem:[%s1358_s3 + $0x50] sm:$0xff] }
  0x68   : > { %504 = vadd.xlane.f32.xlu1 %v503_v58  ;;  %v1509_v42 = vunpack.c.l.bf16 %v262_v33  ;;  %v1511_v43 = vunpack.c.h.bf16 %v262_v33  ;;  %v476_v44 = vmul.f32 %v1493_v27, %v1493_v27  ;;  %v477_v45 = vmul.f32 %v1495_v28, %v1495_v28 }
  0x69   : > { %424 = vadd.xlane.f32.xlu0 %v423_v62  ;;  %v396_v46 = vmul.f32 %v1497_v29, %v1497_v29  ;;  %v397_v49 = vmul.f32 %v1499_v32, %v1499_v32  ;;  %v512_v50 = vadd.f32 %v475_v36, %v474_v24  ;;  %v432_v51 = vadd.f32 %v395_v38, %v394_v37 }
  0x6a   : > { %v1521_v58 = vunpack.c.l.bf16 %v214_v41  ;;  %v1523_v59 = vunpack.c.h.bf16 %v214_v41  ;;  %v478_v62 = vmul.f32 %v1509_v42, %v1509_v42  ;;  %v479_v63 = vmul.f32 %v1511_v43, %v1511_v43  ;;  %v265_v41 = vld [vmem:[%s1365_s29 + $0x58] sm:$0xff] }
  0x6b   : > { %v515_v1 = vadd.f32 %v477_v45, %v476_v44  ;;  %v435_v2 = vadd.f32 %v397_v49, %v396_v46  ;;  %v1532_v7 = vunpack.c.l.bf16 %v263_v60  ;;  %v1534_v12 = vunpack.c.h.bf16 %v263_v60  ;;  %v217_v49 = vld [vmem:[%s1358_s3 + $0x58] sm:$0xff] }
  0x6c   : > { %507 = vadd.xlane.f32.xlu1 %v506_v15  ;;  %v398_v13 = vmul.f32 %v1521_v58, %v1521_v58  ;;  %v399_v15 = vmul.f32 %v1523_v59, %v1523_v59  ;;  %v1542_v20 = vunpack.c.h.bf16 %v215_v61  ;;  %v518_v24 = vadd.f32 %v479_v63, %v478_v62 }
  0x6d   : > { %427 = vadd.xlane.f32.xlu0 %v426_v16  ;;  %v1540_v16 = vunpack.c.l.bf16 %v215_v61  ;;  %v480_v33 = vmul.f32 %v1532_v7, %v1532_v7  ;;  %v481_v36 = vmul.f32 %v1534_v12, %v1534_v12  ;;  %v1553_v37 = vunpack.c.l.bf16 %v216_v21 }
  0x6e   : > { %v1555_v38 = vunpack.c.h.bf16 %v216_v21  ;;  %v438_v44 = vadd.f32 %v399_v15, %v398_v13  ;;  %v401_v46 = vmul.f32 %v1542_v20, %v1542_v20  ;;  %v1567_v60 = vunpack.c.l.bf16 %v265_v41  ;;  %v266_v15 = vld [vmem:[%s1365_s29 + $0x60] sm:$0xff] }
  0x6f   : > { %1932 = vst [vmem:[#allocation13_spill] sm:$0xff] %v1553_v37  ;;  %v400_v45 = vmul.f32 %v1540_v16, %v1540_v16  ;;  %v1569_v61 = vunpack.c.h.bf16 %v265_v41  ;;  %v402_v62 = vmul.f32 %v1553_v37, %v1553_v37  ;;  %v218_v41 = vld [vmem:[%s1358_s3 + $0x60] sm:$0xff]  ;;  %v268_v37 = vld [vmem:[%s1365_s29 + $0x70] sm:$0xff]  ;;  %vm702_vm3 = vcmask 326912  }
  0x70   : > { %510 = vadd.xlane.f32.xlu1 %v509_v22  ;;  %v1545_v22 = vunpack.c.l.bf16 %v264_v0  ;;  %1933 = vst [vmem:[#allocation14_spill] sm:$0xff] %v1555_v38  ;;  %v403_v63 = vmul.f32 %v1555_v38, %v1555_v38  ;;  %v302_v38 = vmul.f32 %v1374_v3, %v1378_v5  ;;  %v1600_v3 = vunpack.c.h.bf16 %v218_v41 }
  0x71   : > { %430 = vadd.xlane.f32.xlu0 %v429_v23  ;;  %v1547_v23 = vunpack.c.h.bf16 %v264_v0  ;;  %1934 = vst [vmem:[#allocation15_spill] sm:$0xff] %v1569_v61  ;;  %v1575_v0 = vunpack.c.l.bf16 %v217_v49  ;;  %v441_v13 = vadd.f32 %v401_v46, %v400_v45  ;;  %v267_v45 = vld [vmem:[%s1365_s29 + $0x68] sm:$0xff]  ;;  %v1596_v46 = vunpack.c.h.bf16 %v266_v15 }
  0x72   : > { %1930 = vst [vmem:[#allocation11_spill] sm:$0xff] %v1545_v22  ;;  %1938 = vst [vmem:[#allocation19_spill] sm:$0xff] %v1600_v3  ;;  %vm709_vm4 = vcmask 392512   ;;  %vm716_vm5 = vcmask 458112   ;;  %vm723_vm6 = vcmask 523712   ;;  %vm730_vm7 = vcmask 589312  }
  0x73   : > { %1931 = vst [vmem:[#allocation12_spill] sm:$0xff] %v1547_v23  ;;  %1936 = vst [vmem:[#allocation17_spill] sm:$0xff] %v1596_v46  ;;  %vm737_vm8 = vcmask 654912   ;;  %vm744_vm9 = vcmask 720512   ;;  %vm751_vm10 = vcmask 786112   ;;  %vm758_vm11 = vcmask 851712  }
  0x74   : > { %513 = vadd.xlane.f32.xlu1 %v512_v50  ;;  %v482_v50 = vmul.f32 %v1545_v22, %v1545_v22  ;;  %v485_v22 = vmul.f32 %v1569_v61, %v1569_v61  ;;  %vm765_vm12 = vcmask 917312   ;;  %vm772_vm13 = vcmask 982912  }
  0x75   : > { %433 = vadd.xlane.f32.xlu0 %v432_v51  ;;  %v483_v51 = vmul.f32 %v1547_v23, %v1547_v23  ;;  %v484_v23 = vmul.f32 %v1567_v60, %v1567_v60  ;;  %vm779_vm14 = vcmask 1048512  }
  0x77   : > { %v524_v21 = vadd.f32 %v483_v51, %v482_v50  ;;  %v1598_v50 = vunpack.c.l.bf16 %v218_v41  ;;  %v1605_v51 = vunpack.c.l.bf16 %v267_v45  ;;  %v220_v41 = vld [vmem:[%s1358_s3 + $0x70] sm:$0xff] }
  0x78   : > { %516 = vadd.xlane.f32.xlu1 %v515_v1  ;;  %v1577_v1 = vunpack.c.h.bf16 %v217_v49  ;;  %v303_v49 = vmul.f32 %v1376_v4, %v1380_v6  ;;  %v219_v4 = vld [vmem:[%s1358_s3 + $0x68] sm:$0xff]  ;;  %v527_v6 = vadd.f32 %v485_v22, %v484_v23  ;;  %v407_v23 = vmul.f32 %v1600_v3, %v1600_v3 }
  0x79   : > { %436 = vadd.xlane.f32.xlu0 %v435_v2  ;;  %v521_v2 = vadd.f32 %v481_v36, %v480_v33  ;;  %v404_v33 = vmul.f32 %v1575_v0, %v1575_v0  ;;  %1937 = vst [vmem:[#allocation18_spill] sm:$0xff] %v1598_v50  ;;  %1939 = vst [vmem:[#allocation20_spill] sm:$0xff] %v1605_v51  ;;  %v406_v22 = vmul.f32 %v1598_v50, %v1598_v50  ;;  %v269_v50 = vld [vmem:[%s1365_s29 + $0x78] sm:$0xff] }
  0x7a   : > { %v405_v36 = vmul.f32 %v1577_v1, %v1577_v1  ;;  %v1603_v5 = vadd.f32 %v303_v49, %v302_v38  ;;  %v487_v38 = vmul.f32 %v1596_v46, %v1596_v46  ;;  %v488_v49 = vmul.f32 %v1605_v51, %v1605_v51 }
  0x7b   : > { %v450_v46 = vadd.f32 %v407_v23, %v406_v22  ;;  %v1635_v3 = vunpack.c.l.bf16 %v220_v41 }
  0x7c   : > { %519 = vadd.xlane.f32.xlu1 %v518_v24  ;;  %v444_v24 = vadd.f32 %v403_v63, %v402_v62  ;;  %v1607_v62 = vunpack.c.h.bf16 %v267_v45  ;;  %v447_v63 = vadd.f32 %v405_v36, %v404_v33  ;;  %v1633_v45 = vunpack.c.h.bf16 %v268_v37 }
  0x7d   : > { %439 = vadd.xlane.f32.xlu0 %v438_v44  ;;  %v1593_v44 = vunpack.c.l.bf16 %v266_v15  ;;  %v1613_v15 = vunpack.c.h.bf16 %v219_v4 }
  0x7e   : > { %1940 = vst [vmem:[#allocation21_spill] sm:$0xff] %v1607_v62  ;;  %v489_v33 = vmul.f32 %v1607_v62, %v1607_v62  ;;  %v221_v62 = vld [vmem:[%s1358_s3 + $0x78] sm:$0xff] }
  0x7f   : > { %1935 = vst [vmem:[#allocation16_spill] sm:$0xff] %v1593_v44  ;;  %1942 = vst [vmem:[#allocation23_spill] sm:$0xff] %v1613_v15  ;;  %v409_v36 = vmul.f32 %v1613_v15, %v1613_v15  ;;  %v491_v15 = vmul.f32 %v1633_v45, %v1633_v45  ;;  %v1655_v22 = vunpack.c.h.bf16 %v221_v62 }
  0x80   : > { %522 = vadd.xlane.f32.xlu1 %v521_v2  ;;  %v486_v2 = vmul.f32 %v1593_v44, %v1593_v44  ;;  %v1637_v44 = vunpack.c.h.bf16 %v220_v41  ;;  %v533_v51 = vadd.f32 %v489_v33, %v488_v49 }
  0x81   : > { %442 = vadd.xlane.f32.xlu0 %v441_v13  ;;  %v1611_v13 = vunpack.c.l.bf16 %v219_v4  ;;  %v413_v33 = vmul.f32 %v1655_v22, %v1655_v22 }
  0x82   : > { %v530_v4 = vadd.f32 %v487_v38, %v486_v2  ;;  %v411_v2 = vmul.f32 %v1637_v44, %v1637_v44  ;;  %v1653_v38 = vunpack.c.l.bf16 %v221_v62  ;;  %v304_v62 = vmul.f32 %v1383_v8, %v1387_v10 }
  0x83   : > { %1941 = vst [vmem:[#allocation22_spill] sm:$0xff] %v1611_v13  ;;  %v307_v8 = vmul.f32 %v1412_v26, %v1417_v31  ;;  %v316_v26 = vmul.f32 %v1493_v27, %v1497_v29  ;;  %v317_v31 = vmul.f32 %v1495_v28, %v1499_v32  ;;  %v1945_v27 = vld [vmem:[#allocation11_spill] sm:$0xff]  ;;  %v1946_v29 = vld [vmem:[#allocation14_spill] sm:$0xff]  ;;  %v1947_v32 = vld [vmem:[#allocation12_spill] sm:$0xff] }
  0x84   : > { %525 = vadd.xlane.f32.xlu1 %v524_v21  ;;  %v1627_v21 = vunpack.c.l.bf16 %v268_v37  ;;  %v1645_v37 = vunpack.c.l.bf16 %v269_v50  ;;  %v412_v49 = vmul.f32 %v1653_v38, %v1653_v38 }
  0x85   : > { %445 = vadd.xlane.f32.xlu0 %v444_v24  ;;  %v408_v24 = vmul.f32 %v1611_v13, %v1611_v13 }
  0x86   : > { %v490_v61 = vmul.f32 %v1627_v21, %v1627_v21  ;;  %v492_v41 = vmul.f32 %v1645_v37, %v1645_v37 }
  0x87   : > { %v453_v13 = vadd.f32 %v409_v36, %v408_v24  ;;  %v305_v24 = vmul.f32 %v1385_v9, %v1389_v11  ;;  %v313_v9 = vmul.f32 %v1457_v55, %v1461_v57  ;;  %v319_v55 = vmul.f32 %v1511_v43, %v1523_v59  ;;  %v1950_v43 = vld [vmem:[#allocation23_spill] sm:$0xff]  ;;  %v1951_v59 = vld [vmem:[#allocation21_spill] sm:$0xff] }
  0x88   : > { %528 = vadd.xlane.f32.xlu1 %v527_v6  ;;  %v1647_v6 = vunpack.c.h.bf16 %v269_v50  ;;  %v536_v23 = vadd.f32 %v491_v15, %v490_v61  ;;  %v459_v15 = vadd.f32 %v413_v33, %v412_v49  ;;  %v324_v57 = vmul.f32 %v1567_v60, %v1575_v0  ;;  %v1953_v60 = vld [vmem:[#allocation16_spill] sm:$0xff] }
  0x89   : > { %448 = vadd.xlane.f32.xlu0 %v447_v63  ;;  %v410_v63 = vmul.f32 %v1635_v3, %v1635_v3  ;;  %v337_v36 = vadd.f32 %v305_v24, %v304_v62  ;;  %v330_v62 = vmul.f32 %v1627_v21, %v1635_v3 }
  0x8a   : > { %v493_v50 = vmul.f32 %v1647_v6, %v1647_v6  ;;  %v333_v49 = vmul.f32 %v1647_v6, %v1655_v22 }
  0x8c   : > { %531 = vadd.xlane.f32.xlu1 %v530_v4  ;;  %v539_v61 = vadd.f32 %v493_v50, %v492_v41  ;;  %v306_v4 = vmul.f32 %v1410_v25, %v1415_v30  ;;  %v311_v25 = vmul.f32 %v1444_v48, %v1453_v53  ;;  %v320_v48 = vmul.f32 %v1532_v7, %v1540_v16 }
  0x8d   : > { %451 = vadd.xlane.f32.xlu0 %v450_v46  ;;  %v456_v46 = vadd.f32 %v411_v2, %v410_v63  ;;  %v312_v63 = vmul.f32 %v1455_v54, %v1459_v56  ;;  %v318_v54 = vmul.f32 %v1509_v42, %v1521_v58  ;;  %v323_v7 = vmul.f32 %v1947_v32, %v1946_v29  ;;  %v1948_v42 = vld [vmem:[#allocation22_spill] sm:$0xff]  ;;  %v1949_v58 = vld [vmem:[#allocation20_spill] sm:$0xff]  ;;  %v1954_v2 = vld [vmem:[#allocation19_spill] sm:$0xff] }
  0x8e   : > { %v340_v11 = vadd.f32 %v307_v8, %v306_v4  ;;  %v329_v16 = vmul.f32 %v1951_v59, %v1950_v43 }
  0x8f   : > { %v349_v30 = vadd.f32 %v313_v9, %v312_v63 }
  0x90   : > { %534 = vadd.xlane.f32.xlu1 %v533_v51  ;;  %v308_v51 = vmul.f32 %v1423_v34, %v1432_v39  ;;  %v310_v34 = vmul.f32 %v1442_v47, %v1451_v52  ;;  %v314_v39 = vmul.f32 %v1481_v14, %v1485_v18  ;;  %v355_v47 = vadd.f32 %v317_v31, %v316_v26  ;;  %v1943_v14 = vld [vmem:[#allocation15_spill] sm:$0xff] }
  0x91   : > { %454 = vadd.xlane.f32.xlu0 %v453_v13  ;;  %v309_v13 = vmul.f32 %v1425_v35, %v1434_v40  ;;  %v315_v40 = vmul.f32 %v1483_v17, %v1487_v19  ;;  %v321_v52 = vmul.f32 %v1534_v12, %v1542_v20  ;;  %v325_v17 = vmul.f32 %v1943_v14, %v1577_v1  ;;  %v1944_v19 = vld [vmem:[#allocation13_spill] sm:$0xff]  ;;  %v1952_v20 = vld [vmem:[#allocation18_spill] sm:$0xff] }
  0x92   : > { %v346_v35 = vadd.f32 %v311_v25, %v310_v34  ;;  %v358_v18 = vadd.f32 %v319_v55, %v318_v54  ;;  %v322_v28 = vmul.f32 %v1945_v27, %v1944_v19  ;;  %v328_v12 = vmul.f32 %v1949_v58, %v1948_v42 }
  0x93   : > { %v343_v10 = vadd.f32 %v309_v13, %v308_v51  ;;  %v352_v53 = vadd.f32 %v315_v40, %v314_v39  ;;  %v361_v56 = vadd.f32 %v321_v52, %v320_v48  ;;  %v326_v0 = vmul.f32 %v1953_v60, %v1952_v20 }
  0x94   : > { %537 = vadd.xlane.f32.xlu1 %v536_v23  ;;  %v367_v1 = vadd.f32 %v325_v17, %v324_v57  ;;  %v1955_v23 = vld [vmem:[#allocation17_spill] sm:$0xff]  ;;  %v373_v50 = vadd.f32 %v329_v16, %v328_v12 }
  0x95   : > { %457 = vadd.xlane.f32.xlu0 %v456_v46  ;;  %v327_v41 = vmul.f32 %v1955_v23, %v1954_v2  ;;  %v332_v46 = vmul.f32 %v1645_v37, %v1653_v38 }
  0x97   : > { %v370_v33 = vadd.f32 %v327_v41, %v326_v0 }
  0x98   : > { %540 = vadd.xlane.f32.xlu1 %v539_v61  ;;  %v331_v61 = vmul.f32 %v1633_v45, %v1637_v44 }
  0x99   : > { %460 = vadd.xlane.f32.xlu0 %v459_v15  ;;  %v379_v15 = vadd.f32 %v333_v49, %v332_v46 }
  0x9a   : > { %v376_v24 = vadd.f32 %v331_v61, %v330_v62 }
  0x9c   : > { %338 = vadd.xlane.f32.xlu1 %v337_v36 }
  0x9d   : > { %335 = vadd.xlane.f32.xlu0 %v1603_v5  ;;  %v364_v5 = vadd.f32 %v323_v7, %v322_v28 }
  0xa0   : > { %344 = vadd.xlane.f32.xlu1 %v343_v10 }
  0xa1   : > { %341 = vadd.xlane.f32.xlu0 %v340_v11 }
  0xa4   : > { %350 = vadd.xlane.f32.xlu1 %v349_v30 }
  0xa5   : > { %347 = vadd.xlane.f32.xlu0 %v346_v35 }
  0xa8   : > { %356 = vadd.xlane.f32.xlu1 %v355_v47 }
  0xa9   : > { %353 = vadd.xlane.f32.xlu0 %v352_v53 }
  0xac   : > { %362 = vadd.xlane.f32.xlu1 %v361_v56 }
  0xad   : > { %359 = vadd.xlane.f32.xlu0 %v358_v18  ;;  %v670_v18 = vlaneseq }
  0xaf   : > { %v1750_v42 = vand.u32 127, %v670_v18 }
  0xb0   : > { %368 = vadd.xlane.f32.xlu1 %v367_v1  ;;  %v1756_v1 = vshrl.u32 %v670_v18, 7 }
  0xb1   : > { %365 = vadd.xlane.f32.xlu0 %v364_v5  ;;  %v1759_v5 = vadd.s32 4294967288, %v1750_v42  ;;  %v1762_v23 = vadd.s32 4294967272, %v1750_v42  ;;  %v1765_v41 = vadd.s32 4294967280, %v1750_v42  ;;  %v1769_v49 = vadd.s32 4294967256, %v1750_v42 }
  0xb4   : > { %374 = vadd.xlane.f32.xlu1 %v373_v50 }
  0xb5   : > { %371 = vadd.xlane.f32.xlu0 %v370_v33  ;;  %v1772_v33 = vadd.s32 4294967264, %v1750_v42 }
  0xb8   : > { %380 = vadd.xlane.f32.xlu1 %v379_v15 }
  0xb9   : > { %377 = vadd.xlane.f32.xlu0 %v376_v24 }
  0xe9   : > { %v496_v51 = vpop.xlane.xlu1 %495 }
  0xea   : > { %v416_v37 = vpop.xlane.xlu0 %415  ;;  %v574_v26 = vmax.f32 %v496_v51, 1e-16 }
  0xeb   : > { %v542_v39 = vmax.f32 %v416_v37, 1e-16 }
  0xec   : > { %978 = vrsqrt.f32 %v574_v26  ;;  %v1797_v26 = vadd.s32 4294967240, %v1750_v42 }
  0xed   : > { %v499_v38 = vpop.xlane.xlu1 %498  ;;  %980 = vrsqrt.f32 %v542_v39 }
  0xee   : > { %v419_v13 = vpop.xlane.xlu0 %418  ;;  %v575_v40 = vmax.f32 %v499_v38, 1e-16  ;;  %v679_v38 = vsub.s32 %v1759_v5, %v1756_v1 }
  0xef   : > { %v543_v47 = vmax.f32 %v419_v13, 1e-16 }
  0xf0   : > { %982 = vrsqrt.f32 %v575_v40 }
  0xf1   : > { %v502_v6 = vpop.xlane.xlu1 %501  ;;  %984 = vrsqrt.f32 %v543_v47 }
  0xf2   : > { %v422_v22 = vpop.xlane.xlu0 %421  ;;  %v576_v48 = vmax.f32 %v502_v6, 1e-16 }
  0xf3   : > { %v544_v54 = vmax.f32 %v422_v22, 1e-16  ;;  %v674_v22 = vsub.s32 %v1750_v42, %v1756_v1 }
  0xf4   : > { %986 = vrsqrt.f32 %v576_v48 }
  0xf5   : > { %v505_v36 = vpop.xlane.xlu1 %504  ;;  %988 = vrsqrt.f32 %v544_v54 }
  0xf6   : > { %v425_v4 = vpop.xlane.xlu0 %424  ;;  %v577_v55 = vmax.f32 %v505_v36, 1e-16  ;;  %v979_v12 = vpop.eup %978  ;;  %v693_v36 = vsub.s32 %v1762_v23, %v1756_v1 }
  0xf7   : > { %v545_v56 = vmax.f32 %v425_v4, 1e-16  ;;  %v981_v59 = vpop.eup %980  ;;  %v686_v4 = vsub.s32 %v1765_v41, %v1756_v1 }
  0xf8   : > { %990 = vrsqrt.f32 %v577_v55 }
  0xf9   : > { %v508_v8 = vpop.xlane.xlu1 %507  ;;  %992 = vrsqrt.f32 %v545_v56 }
  0xfa   : > { %v428_v10 = vpop.xlane.xlu0 %427  ;;  %v578_v57 = vmax.f32 %v508_v8, 1e-16  ;;  %v983_v20 = vpop.eup %982 }
  0xfb   : > { %v546_v19 = vmax.f32 %v428_v10, 1e-16  ;;  %v985_v2 = vpop.eup %984 }
  0xfc   : > { %994 = vrsqrt.f32 %v578_v57 }
  0xfd   : > { %v511_v3 = vpop.xlane.xlu1 %510  ;;  %996 = vrsqrt.f32 %v546_v19 }
  0xfe   : > { %v431_v21 = vpop.xlane.xlu0 %430  ;;  %v579_v27 = vmax.f32 %v511_v3, 1e-16  ;;  %v987_v50 = vpop.eup %986  ;;  %v707_v3 = vsub.s32 %v1769_v49, %v1756_v1  ;;  %v746_v49 = vadd.s32 4294967208, %v1750_v42 }
  0xff   : > { %v547_v28 = vmax.f32 %v431_v21, 1e-16  ;;  %v989_v62 = vpop.eup %988  ;;  %v700_v21 = vsub.s32 %v1772_v33, %v1756_v1 }
 0x100   : > { %998 = vrsqrt.f32 %v579_v27  ;;  %v608_v55 = vmul.f32 %v989_v62, %v987_v50 }
 0x101   : > { %v514_v63 = vpop.xlane.xlu1 %513  ;;  %1000 = vrsqrt.f32 %v547_v28 }
 0x102   : > { %v434_v44 = vpop.xlane.xlu0 %433  ;;  %v580_v29 = vmax.f32 %v514_v63, 1e-16  ;;  %v991_v15 = vpop.eup %990 }
 0x103   : > { %v548_v58 = vmax.f32 %v434_v44, 1e-16  ;;  %v993_v13 = vpop.eup %992 }
 0x104   : > { %1002 = vrsqrt.f32 %v580_v29 }
 0x105   : > { %v517_v45 = vpop.xlane.xlu1 %516  ;;  %1004 = vrsqrt.f32 %v548_v58 }
 0x106   : > { %v437_v9 = vpop.xlane.xlu0 %436  ;;  %v581_v43 = vmax.f32 %v517_v45, 1e-16  ;;  %v995_v8 = vpop.eup %994  ;;  %v607_v45 = vmul.f32 %v985_v2, %v983_v20 }
 0x107   : > { %v549_v16 = vmax.f32 %v437_v9, 1e-16  ;;  %v997_v63 = vpop.eup %996  ;;  %v606_v9 = vmul.f32 %v981_v59, %v979_v12 }
 0x108   : > { %1006 = vrsqrt.f32 %v581_v43  ;;  %v610_v58 = vmul.f32 %v997_v63, %v995_v8 }
 0x109   : > { %v1726_v11 = vpop.xlane.xlu1 %519  ;;  %1008 = vrsqrt.f32 %v549_v16 }
 0x10a   : > { %v1728_v34 = vpop.xlane.xlu0 %439  ;;  %v582_v46 = vmax.f32 %v1726_v11, 1e-16  ;;  %v999_v11 = vpop.eup %998 }
 0x10b   : > { %v550_v61 = vmax.f32 %v1728_v34, 1e-16  ;;  %v1001_v39 = vpop.eup %1000 }
 0x10c   : > { %1010 = vrsqrt.f32 %v582_v46  ;;  %v611_v16 = vmul.f32 %v1001_v39, %v999_v11 }
 0x10d   : > { %v1730_v25 = vpop.xlane.xlu1 %522  ;;  %1012 = vrsqrt.f32 %v550_v61 }
 0x10e   : > { %v1732_v30 = vpop.xlane.xlu0 %442  ;;  %v583_v24 = vmax.f32 %v1730_v25, 1e-16  ;;  %v1003_v48 = vpop.eup %1002 }
 0x10f   : > { %v551_v6 = vmax.f32 %v1732_v30, 1e-16  ;;  %v1005_v56 = vpop.eup %1004 }
 0x110   : > { %1014 = vrsqrt.f32 %v583_v24 }
 0x111   : > { %v1734_v31 = vpop.xlane.xlu1 %525  ;;  %1016 = vrsqrt.f32 %v551_v6 }
 0x112   : > { %v1736_v35 = vpop.xlane.xlu0 %445  ;;  %v584_v10 = vmax.f32 %v1734_v31, 1e-16  ;;  %v1800_v31 = vadd.s32 4294967248, %v1750_v42  ;;  %v1007_v27 = vpop.eup %1006 }
 0x113   : > { %v552_v44 = vmax.f32 %v1736_v35, 1e-16  ;;  %v1009_v12 = vpop.eup %1008 }
 0x114   : > { %1018 = vrsqrt.f32 %v584_v10  ;;  %v613_v24 = vmul.f32 %v1009_v12, %v1007_v27  ;;  %v714_v11 = vsub.s32 %v1800_v31, %v1756_v1 }
 0x115   : > { %v1738_v52 = vpop.xlane.xlu1 %528  ;;  %1020 = vrsqrt.f32 %v552_v44 }
 0x116   : > { %v1740_v53 = vpop.xlane.xlu0 %448  ;;  %v585_v34 = vmax.f32 %v1738_v52, 1e-16  ;;  %v609_v52 = vmul.f32 %v993_v13, %v991_v15  ;;  %v1011_v46 = vpop.eup %1010  ;;  %v612_v13 = vmul.f32 %v1005_v56, %v1003_v48 }
 0x117   : > { %v553_v35 = vmax.f32 %v1740_v53, 1e-16  ;;  %v1013_v6 = vpop.eup %1012 }
 0x118   : > { %1022 = vrsqrt.f32 %v585_v34 }
 0x119   : > { %v1742_v14 = vpop.xlane.xlu1 %531  ;;  %1024 = vrsqrt.f32 %v553_v35 }
 0x11a   : > { %v1744_v17 = vpop.xlane.xlu0 %451  ;;  %v586_v54 = vmax.f32 %v1742_v14, 1e-16  ;;  %v721_v14 = vsub.s32 %v1797_v26, %v1756_v1  ;;  %v753_v26 = vadd.s32 4294967200, %v1750_v42 }
 0x11b   : > { %v554_v57 = vmax.f32 %v1744_v17, 1e-16 }
 0x11c   : > { %1026 = vrsqrt.f32 %v586_v54 }
 0x11d   : > { %v1746_v32 = vpop.xlane.xlu1 %534  ;;  %1028 = vrsqrt.f32 %v554_v57 }
 0x11e   : > { %v1748_v7 = vpop.xlane.xlu0 %454  ;;  %v587_v28 = vmax.f32 %v1746_v32, 1e-16 }
 0x11f   : > { %v555_v17 = vmax.f32 %v1748_v7, 1e-16 }
 0x120   : > { %1030 = vrsqrt.f32 %v587_v28 }
 0x121   : > { %v1752_v60 = vpop.xlane.xlu1 %537  ;;  %1032 = vrsqrt.f32 %v555_v17 }
 0x122   : > { %v1754_v0 = vpop.xlane.xlu0 %457  ;;  %v588_v32 = vmax.f32 %v1752_v60, 1e-16 }
 0x123   : > { %v556_v62 = vmax.f32 %v1754_v0, 1e-16 }
 0x124   : > { %1034 = vrsqrt.f32 %v588_v32 }
 0x125   : > { %v1776_v51 = vpop.xlane.xlu1 %540  ;;  %1036 = vrsqrt.f32 %v556_v62  ;;  %v760_v62 = vadd.s32 4294967192, %v1750_v42 }
 0x126   : > { %v1778_v37 = vpop.xlane.xlu0 %460  ;;  %v589_v8 = vmax.f32 %v1776_v51, 1e-16 }
 0x127   : > { %v557_v10 = vmax.f32 %v1778_v37, 1e-16  ;;  %v732_v37 = vadd.s32 4294967224, %v1750_v42 }
 0x128   : > { %1038 = vrsqrt.f32 %v589_v8 }
 0x129   : > { %v339_v25 = vpop.xlane.xlu1 %338  ;;  %1040 = vrsqrt.f32 %v557_v10  ;;  %v735_v33 = vsub.s32 %v732_v37, %v1756_v1 }
 0x12a   : > { %v336_v30 = vpop.xlane.xlu0 %335  ;;  %v623_v40 = vmul.f32 %v607_v45, %v339_v25  ;;  %v725_v25 = vadd.s32 4294967232, %v1750_v42 }
 0x12b   : > { %v622_v47 = vmul.f32 %v606_v9, %v336_v30 }
 0x12c   : > { %v639_v18 = vsub.f32 1.0, %v623_v40 }
 0x12d   : > { %v638_v19 = vsub.f32 1.0, %v622_v47  ;;  %v345_v53 = vpop.xlane.xlu1 %344  ;;  %v614_v47 = vmul.f32 %v1013_v6, %v1011_v46 }
 0x12e   : > { %v342_v29 = vpop.xlane.xlu0 %341  ;;  %v625_v43 = vmul.f32 %v609_v52, %v345_v53  ;;  %v680_v20 = vrot.slane %v639_v18, %v679_v38  ;;  %v728_v18 = vsub.s32 %v725_v25, %v1756_v1  ;;  %v767_v25 = vadd.s32 4294967184, %v1750_v42 }
 0x12f   : > { %v624_v59 = vmul.f32 %v608_v55, %v342_v29  ;;  %v675_v5 = vrot.slane %v638_v19, %v674_v22  ;;  %v1015_v22 = vpop.eup %1014  ;;  %v739_v29 = vadd.s32 4294967216, %v1750_v42 }
 0x130   : > { %v641_v2 = vsub.f32 1.0, %v625_v43  ;;  %v1017_v44 = vpop.eup %1016 }
 0x131   : > { %v640_v50 = vsub.f32 1.0, %v624_v59  ;;  %v351_v61 = vpop.xlane.xlu1 %350  ;;  %v682_v63 = vsel %vm681_vm0, %v680_v20, %v675_v5  ;;  %v1019_v41 = vpop.eup %1018  ;;  %v615_v56 = vmul.f32 %v1017_v44, %v1015_v22 }
 0x132   : > { %v348_v15 = vpop.xlane.xlu0 %347  ;;  %v627_v38 = vmul.f32 %v611_v16, %v351_v61  ;;  %v694_v0 = vrot.slane %v641_v2, %v693_v36  ;;  %v1021_v30 = vpop.eup %1020  ;;  %v749_v2 = vsub.s32 %v746_v49, %v1756_v1 }
 0x133   : > { %v687_v7 = vrot.slane %v640_v50, %v686_v4  ;;  %v626_v60 = vmul.f32 %v610_v58, %v348_v15  ;;  %v1023_v35 = vpop.eup %1022  ;;  %v616_v59 = vmul.f32 %v1021_v30, %v1019_v41 }
 0x134   : > { %v643_v45 = vsub.f32 1.0, %v627_v38  ;;  %v1025_v48 = vpop.eup %1024 }
 0x135   : > { %v689_v51 = vsel %vm688_vm1, %v687_v7, %v682_v63  ;;  %v642_v9 = vsub.f32 1.0, %v626_v60  ;;  %v357_v4 = vpop.xlane.xlu1 %356  ;;  %v1027_v57 = vpop.eup %1026  ;;  %v617_v5 = vmul.f32 %v1025_v48, %v1023_v35 }
 0x136   : > { %v354_v34 = vpop.xlane.xlu0 %353  ;;  %v629_v36 = vmul.f32 %v613_v24, %v357_v4  ;;  %v708_v40 = vrot.slane %v643_v45, %v707_v3  ;;  %v696_v31 = vsel %vm695_vm2, %v694_v0, %v689_v51  ;;  %v1029_v3 = vpop.eup %1028  ;;  %v742_v24 = vsub.s32 %v739_v29, %v1756_v1 }
 0x137   : > { %v701_v23 = vrot.slane %v642_v9, %v700_v21  ;;  %v628_v39 = vmul.f32 %v612_v13, %v354_v34  ;;  %v1031_v58 = vpop.eup %1030  ;;  %v618_v38 = vmul.f32 %v1029_v3, %v1027_v57  ;;  %v763_v51 = vsub.s32 %v760_v62, %v1756_v1 }
 0x138   : > { %v645_v52 = vsub.f32 1.0, %v629_v36  ;;  %v1033_v32 = vpop.eup %1032  ;;  %v756_v9 = vsub.s32 %v753_v26, %v1756_v1  ;;  %v774_v4 = vadd.s32 4294967176, %v1750_v42  ;;  %v770_v42 = vsub.s32 %v767_v25, %v1756_v1 }
 0x139   : > { %v703_v54 = vsel %vm702_vm3, %v701_v23, %v696_v31  ;;  %v644_v55 = vsub.f32 1.0, %v628_v39  ;;  %v363_v21 = vpop.xlane.xlu1 %362  ;;  %v619_v0 = vmul.f32 %v1033_v32, %v1031_v58 }
 0x13a   : > { %v360_v19 = vpop.xlane.xlu0 %359  ;;  %v631_v28 = vmul.f32 %v615_v56, %v363_v21  ;;  %v722_v12 = vrot.slane %v645_v52, %v721_v14  ;;  %v710_v43 = vsel %vm709_vm4, %v708_v40, %v703_v54  ;;  %v1035_v14 = vpop.eup %1034 }
 0x13b   : > { %v715_v27 = vrot.slane %v644_v55, %v714_v11  ;;  %v630_v53 = vmul.f32 %v614_v47, %v360_v19  ;;  %v1037_v6 = vpop.eup %1036  ;;  %v777_v47 = vsub.s32 %v774_v4, %v1756_v1 }
 0x13c   : > { %v647_v17 = vsub.f32 1.0, %v631_v28  ;;  %v1039_v60 = vpop.eup %1038  ;;  %v620_v36 = vmul.f32 %v1037_v6, %v1035_v14 }
 0x13d   : > { %v717_v16 = vsel %vm716_vm5, %v715_v27, %v710_v43  ;;  %v646_v20 = vsub.f32 1.0, %v630_v53  ;;  %v369_v50 = vpop.xlane.xlu1 %368  ;;  %v1041_v44 = vpop.eup %1040 }
 0x13e   : > { %v366_v46 = vpop.xlane.xlu0 %365  ;;  %v633_v15 = vmul.f32 %v617_v5, %v369_v50  ;;  %v736_v8 = vrot.slane %v647_v17, %v735_v33  ;;  %v724_v7 = vsel %vm723_vm6, %v722_v12, %v717_v16  ;;  %v621_v31 = vmul.f32 %v1041_v44, %v1039_v60 }
 0x13f   : > { %v729_v61 = vrot.slane %v646_v20, %v728_v18  ;;  %v632_v13 = vmul.f32 %v616_v59, %v366_v46 }
 0x140   : > { %v649_v10 = vsub.f32 1.0, %v633_v15 }
 0x141   : > { %v731_v22 = vsel %vm730_vm7, %v729_v61, %v724_v7  ;;  %v648_v63 = vsub.f32 1.0, %v632_v13  ;;  %v375_v45 = vpop.xlane.xlu1 %374 }
 0x142   : > { %v372_v41 = vpop.xlane.xlu0 %371  ;;  %v635_v34 = vmul.f32 %v619_v0, %v375_v45  ;;  %v750_v30 = vrot.slane %v649_v10, %v749_v2  ;;  %v738_v23 = vsel %vm737_vm8, %v736_v8, %v731_v22 }
 0x143   : > { %v743_v11 = vrot.slane %v648_v63, %v742_v24  ;;  %v634_v37 = vmul.f32 %v618_v38, %v372_v41 }
 0x144   : > { %v651_v35 = vsub.f32 1.0, %v635_v34 }
 0x145   : > { %v745_v39 = vsel %vm744_vm9, %v743_v11, %v738_v23  ;;  %v650_v40 = vsub.f32 1.0, %v634_v37  ;;  %v381_v48 = vpop.xlane.xlu1 %380 }
 0x146   : > { %v378_v54 = vpop.xlane.xlu0 %377  ;;  %v637_v55 = vmul.f32 %v621_v31, %v381_v48  ;;  %v764_v57 = vrot.slane %v651_v35, %v763_v51  ;;  %v752_v33 = vsel %vm751_vm10, %v750_v30, %v745_v39 }
 0x147   : > { %v757_v52 = vrot.slane %v650_v40, %v756_v9  ;;  %v636_v56 = vmul.f32 %v620_v36, %v378_v54 }
 0x148   : > { %v653_v18 = vsub.f32 1.0, %v637_v55 }
 0x149   : > { %v759_v21 = vsel %vm758_vm11, %v757_v52, %v752_v33  ;;  %v652_v19 = vsub.f32 1.0, %v636_v56 }
 0x14a   : > { %v778_v49 = vrot.slane %v653_v18, %v777_v47  ;;  %v766_v27 = vsel %vm765_vm12, %v764_v57, %v759_v21 }
 0x14b   : > { %v771_v3 = vrot.slane %v652_v19, %v770_v42 }
 0x14d   : > { %v773_v28 = vsel %vm772_vm13, %v771_v3, %v766_v27 }
 0x14e   : > { %v780_v1 = vsel %vm779_vm14, %v778_v49, %v773_v28 }
 0x14f   : > { %794 = vst [vmem:[%s203_s6] sm:$0xff] %v780_v1 }
 0x150   : > { %1115 = shalt.err (!%p1112_p11)
}
 0x151   : > { %s1116_s8 = scalar_lea.hbm %s1861_s24, 128  ;;  %s1120_s4 = scalar_lea.hbm %s1907_s2, 256 }
 0x152   : > { %p1117_p3 = scmp.ne.s32.totalorder %s1861_s24, %s1116_s8  ;;  %p1121_p2 = scmp.lt.u32.totalorder %s1861_s24, %s1907_s2 }
 0x153   : > { %p1122_p4 = scmp.lt.u32.totalorder %s1120_s4, %s1116_s8  ;;  %p1124_p13 = scmp.lt.u32.totalorder %s1116_s8, %s1861_s24 }
 0x154   : > { %p1118_p8 = pnand %p1117_p3, %p1956_p1 }
 0x155   : > { %p1123_p6 = por %p1122_p4, %p1121_p2 }
 0x156   : > { %p1119_p0 = pneg %p1118_p8 }
 0x157   : > { %p1125_p12 = por %p1124_p13, %p1123_p6 }
 0x159   : > { %p1126_p10 = pnand %p1125_p12, %p1119_p0 }
 0x15b   : > { %1129 = shalt.err (!%p1126_p10)
}
 0x15c   : > { %929 = dma.vmem_to_hbm [thread:$0]  (%p1956_p1), %s1863_s14, 128, %s1861_s24, %s796_s13  }
 0x15d PF: > { %s821_s23 = sand.u32 1, %s1160_s9   ;;  %p1957_p5 = scmp.ne.s32.totalorder %s1926_s22, 0 }
 0x15e   : > { %p1958_p7 = scmp.ge.s32.totalorder %s1172_s12, 2  ;;  %s822_s29 = scalar_lea.sflag [#allocation4], %s821_s23 }
 0x160   : > { %p939_p9 = pnand %p1958_p7, %p1957_p5 }
 0x162   : > { %1155 = dma.done.wait (!%p939_p9), %s822_s29, 128  }
 0x163   : > { %1157 = vsyncadd (!%p939_p9), %s822_s29, 4294967168  ;;  %p18_p11 = scmp.ge.s32.totalorder %s1219_s15, 4   ;;  %s1959_s9 = smov %s1164_s10 }
 0x164   : > { %s1960_s10 = smov %s1168_s11  ;;  %s1961_s11 = smov %s1231_s18 }
 0x165   : > { %s1962_s12 = smov %s1219_s15  ;;  %20 = sbr.rel (!%p18_p11) target bundleno = 7 (0x7), region = 86 }
 0x16c   :  { %827 = vsyncpa [#allocation3], 1 }
 0x16d   :  { %829 = vsyncpa [#allocation3 + $0x1], 1 }
 0x16e   :  { %830 = vsyncpa [#allocation6], 1 }
 0x16f   :  { %832 = vsyncpa [#allocation6 + $0x1], 1 }
 0x170   :  { %833 = vsyncpa [#allocation4], 1 }
 0x171   :  { %835 = vsyncpa [#allocation4 + $0x1], 1 }

</bundles_post_ra>
